<compile_context>
chip_gen: v6e
topology: v6e:2x2x1
jax: 0.10.0
libtpu: 0.0.40
codegen_flags: <defaults>
</compile_context>

<pallas_src>
import functools

import jax
import jax.numpy as jnp
from jax.experimental import pallas as pl
from jax.experimental.pallas import tpu as pltpu


def _round_up(n, m):
    return ((n + m - 1) // m) * m


def mlp_kernel(x_ref, w1_ref, b1_ref, w2_ref, b2_ref,
               w3_ref, b3_ref, w4_ref, b4_ref, o_ref):
    # bf16 operands feed the MXU at full rate; accumulate + elementwise in f32.
    # If the caller already supplies bf16 x, this cast is a no-op.
    x = x_ref[...].astype(jnp.bfloat16)

    # fc1 + sigmoid
    h = jnp.dot(x, w1_ref[...], preferred_element_type=jnp.float32) + b1_ref[...]
    h = jax.nn.sigmoid(h)
    # fc2 + sigmoid
    h = jnp.dot(h.astype(jnp.bfloat16), w2_ref[...],
                preferred_element_type=jnp.float32) + b2_ref[...]
    h = jax.nn.sigmoid(h)
    # fc3 + sigmoid (padded to 128 lanes; padded lanes give sigmoid(0)=0.5, which hit
    # exactly-zero rows of the padded w4, so the result is unchanged)
    h = jnp.dot(h.astype(jnp.bfloat16), w3_ref[...],
                preferred_element_type=jnp.float32) + b3_ref[...]
    h = jax.nn.sigmoid(h)
    # fc4 + softmax over the (padded) class axis; padded logits are ~-1e30 -> exp == 0
    logits = jnp.dot(h.astype(jnp.bfloat16), w4_ref[...],
                     preferred_element_type=jnp.float32) + b4_ref[...]
    m = jnp.max(logits, axis=-1, keepdims=True)
    e = jnp.exp(logits - m)
    s = jnp.sum(e, axis=-1, keepdims=True)
    probs = e / s  # exact normalization: kernel is HBM-bound, divide is free
    # Narrow lane-masked store of the 10 real classes only (HBM side is contiguous).
    o_ref[...] = probs[:, :o_ref.shape[-1]]


def net_forward(x, prepared, tb=2048):
    """x: [B, 64] f32 or bf16. prepared: padded / bf16 params from prepare_params."""
    w1, b1, w2, b2, w3, b3, w4, b4 = prepared
    B = x.shape[0]
    # Large batch tile to amortize per-step pipeline overhead, but keep >= 2 grid steps
    # (when possible) so "parallel" can shard across both v7x TensorCores.
    TB = max(8, min(tb, _round_up(pl.cdiv(B, 2), 8)))
    grid = (pl.cdiv(B, TB),)  # ragged tail handled by Pallas partial-block masking

    const = lambda shape: pl.BlockSpec(shape, lambda i: (0, 0))  # VMEM-resident params

    x_bytes = x.size * x.dtype.itemsize
    w_bytes = sum(a.size * a.dtype.itemsize for a in (w1, w2, w3, w4, b1, b2, b3, b4))

    out = pl.pallas_call(
        mlp_kernel,
        out_shape=jax.ShapeDtypeStruct((B, 10), jnp.float32),
        grid=grid,
        in_specs=[
            pl.BlockSpec((TB, 64), lambda i: (i, 0)),    # x batch tile
            const((64, 64)),  const((1, 64)),            # fc1
            const((64, 64)),  const((1, 64)),            # fc2
            const((64, 128)), const((1, 128)),           # fc3 (padded out)
            const((128, 128)), const((1, 128)),          # fc4 (padded in/out)
        ],
        out_specs=pl.BlockSpec((TB, 10), lambda i: (i, 0)),
        compiler_params=pltpu.CompilerParams(
            # batch tiles are independent -> shard across both v7x TensorCores
            dimension_semantics=("parallel",),
            # large tiles + f32 intermediates can exceed v5e's 16 MiB scoped default
            vmem_limit_bytes=32 * 1024 * 1024,
        ),
        cost_estimate=pl.CostEstimate(
            flops=2 * B * (64 * 64 + 64 * 64 + 64 * 128 + 128 * 128),
            transcendentals=B * (64 + 64 + 128 + 128),
            bytes_accessed=x_bytes + B * 10 * 4 + w_bytes,
        ),
    )(x, w1, b1, w2, b2, w3, b3, w4, b4)
    return out


def init_params(key):
    # Deterministic synthetic init (PyTorch-like uniform bounds), logical shapes.
    def linear(key, fan_in, fan_out):
        kw, kb = jax.random.split(key)
        bound = 1.0 / jnp.sqrt(fan_in)
        w = jax.random.uniform(kw, (fan_in, fan_out), jnp.float32, -bound, bound)
        b = jax.random.uniform(kb, (1, fan_out), jnp.float32, -bound, bound)
        return w, b

    k1, k2, k3, k4 = jax.random.split(key, 4)
    return (
        linear(k1, 64, 64),
        linear(k2, 64, 64),
        linear(k3, 64, 10),
        linear(k4, 10, 10),
    )


def prepare_params(params):
    """Pad the narrow tail to 128 lanes and cast weights to bf16 (done once, offline).

    Invariants required by the kernel's padded-softmax scheme:
      * w3p pad columns exactly zero, b3p pad columns exactly zero
      * w4p rows/cols 10..127 exactly zero
      * b4p pad columns -1e30 (kept in f32) so padded logits vanish under softmax
    """
    (w1, b1), (w2, b2), (w3, b3), (w4, b4) = params
    w3p = jnp.zeros((64, 128), jnp.float32).at[:, :10].set(w3)
    b3p = jnp.zeros((1, 128), jnp.float32).at[:, :10].set(b3)
    w4p = jnp.zeros((128, 128), jnp.float32).at[:10, :10].set(w4)
    b4p = jnp.full((1, 128), -1e30, jnp.float32).at[:, :10].set(b4)
    bf16 = lambda w: w.astype(jnp.bfloat16)
    return (bf16(w1), b1, bf16(w2), b2, bf16(w3p), b3p, bf16(w4p), b4p)


def ref_forward(x, params):
    (w1, b1), (w2, b2), (w3, b3), (w4, b4) = params
    h = jax.nn.sigmoid(x @ w1 + b1)
    h = jax.nn.sigmoid(h @ w2 + b2)
    h = jax.nn.sigmoid(h @ w3 + b3)
    return jax.nn.softmax(h @ w4 + b4, axis=1)


if __name__ == "__main__":
    key = jax.random.PRNGKey(0)
    kx, kx2, kp = jax.random.split(key, 3)
    params = init_params(kp)
    prepared = prepare_params(params)

    # Small, even batch.
    B = 8
    x = jax.random.normal(kx, (B, 64), jnp.float32)
    out = jax.block_until_ready(net_forward(x, prepared))
    ref = ref_forward(x, params)
    assert out.shape == (B, 10)
    assert jnp.allclose(jnp.sum(out, axis=1), 1.0, atol=1e-3)
    assert jnp.max(jnp.abs(out - ref)) < 5e-2

    # Ragged batch (B not a multiple of the tile): exercises the no-pad masked tail path.
    B2 = 13
    x2 = jax.random.normal(kx2, (B2, 64), jnp.float32)
    out2 = jax.block_until_ready(net_forward(x2, prepared))
    ref2 = ref_forward(x2, params)
    assert out2.shape == (B2, 10)
    assert jnp.allclose(jnp.sum(out2, axis=1), 1.0, atol=1e-3)
    assert jnp.max(jnp.abs(out2 - ref2)) < 5e-2

    print("KERNEL_OK")
</pallas_src>

<mosaic_0001>
module attributes {stable_mosaic.version = 11 : i64} {
  func.func @mlp_kernel(%arg0: i32, %arg1: memref<8x64xf32, #tpu.memory_space<vmem>>, %arg2: memref<64x64xbf16, #tpu.memory_space<vmem>>, %arg3: memref<1x64xf32, #tpu.memory_space<vmem>>, %arg4: memref<64x64xbf16, #tpu.memory_space<vmem>>, %arg5: memref<1x64xf32, #tpu.memory_space<vmem>>, %arg6: memref<64x128xbf16, #tpu.memory_space<vmem>>, %arg7: memref<1x128xf32, #tpu.memory_space<vmem>>, %arg8: memref<128x128xbf16, #tpu.memory_space<vmem>>, %arg9: memref<1x128xf32, #tpu.memory_space<vmem>>, %arg10: memref<8x10xf32, #tpu.memory_space<vmem>>) attributes {dimension_semantics = [#tpu.dimension_semantics<parallel>], iteration_bounds = array<i64: 1>, scalar_prefetch = 0 : i64, scratch_operands = 0 : i64, tpu.core_type = #tpu.core_type<tc>, window_params = [{transform_indices = @transform_0, window_bounds = array<i64: 8, 64>}, {pipeline_mode = #tpu.pipeline_mode<synchronous>, transform_indices = @transform_1, window_bounds = array<i64: 64, 64>}, {pipeline_mode = #tpu.pipeline_mode<synchronous>, transform_indices = @transform_2, window_bounds = array<i64: 1, 64>}, {pipeline_mode = #tpu.pipeline_mode<synchronous>, transform_indices = @transform_3, window_bounds = array<i64: 64, 64>}, {pipeline_mode = #tpu.pipeline_mode<synchronous>, transform_indices = @transform_4, window_bounds = array<i64: 1, 64>}, {pipeline_mode = #tpu.pipeline_mode<synchronous>, transform_indices = @transform_5, window_bounds = array<i64: 64, 128>}, {pipeline_mode = #tpu.pipeline_mode<synchronous>, transform_indices = @transform_6, window_bounds = array<i64: 1, 128>}, {pipeline_mode = #tpu.pipeline_mode<synchronous>, transform_indices = @transform_7, window_bounds = array<i64: 128, 128>}, {pipeline_mode = #tpu.pipeline_mode<synchronous>, transform_indices = @transform_8, window_bounds = array<i64: 1, 128>}, {transform_indices = @transform_9, window_bounds = array<i64: 8, 10>}]} {
    %c0 = arith.constant 0 : index
    %c0_0 = arith.constant 0 : index
    %0 = vector.load %arg1[%c0, %c0_0] : memref<8x64xf32, #tpu.memory_space<vmem>>, vector<8x64xf32>
    %1 = arith.truncf %0 : vector<8x64xf32> to vector<8x64xbf16>
    %c0_1 = arith.constant 0 : index
    %c0_2 = arith.constant 0 : index
    %2 = vector.load %arg2[%c0_1, %c0_2] : memref<64x64xbf16, #tpu.memory_space<vmem>>, vector<64x64xbf16>
    %cst = arith.constant dense<0.000000e+00> : vector<8x64xf32>
    %3 = tpu.matmul %1, %2, %cst {dimension_numbers = #tpu.dot_dimension_numbers<[1], [0], [0], [1], [0, 0, 1, 1], [], []>} : vector<8x64xbf16>, vector<64x64xbf16>, vector<8x64xf32> -> vector<8x64xf32>
    %c0_3 = arith.constant 0 : index
    %c0_4 = arith.constant 0 : index
    %4 = vector.load %arg3[%c0_3, %c0_4] : memref<1x64xf32, #tpu.memory_space<vmem>>, vector<1x64xf32>
    %5 = vector.broadcast %4 : vector<1x64xf32> to vector<8x64xf32>
    %6 = arith.addf %3, %5 : vector<8x64xf32>
    %7 = arith.negf %6 : vector<8x64xf32>
    %8 = math.exp %7 : vector<8x64xf32>
    %cst_5 = arith.constant 1.000000e+00 : f32
    %9 = vector.broadcast %cst_5 : f32 to vector<8x64xf32>
    %10 = arith.addf %9, %8 : vector<8x64xf32>
    %11 = arith.divf %9, %10 : vector<8x64xf32>
    %12 = arith.truncf %11 : vector<8x64xf32> to vector<8x64xbf16>
    %c0_6 = arith.constant 0 : index
    %c0_7 = arith.constant 0 : index
    %13 = vector.load %arg4[%c0_6, %c0_7] : memref<64x64xbf16, #tpu.memory_space<vmem>>, vector<64x64xbf16>
    %cst_8 = arith.constant dense<0.000000e+00> : vector<8x64xf32>
    %14 = tpu.matmul %12, %13, %cst_8 {dimension_numbers = #tpu.dot_dimension_numbers<[1], [0], [0], [1], [0, 0, 1, 1], [], []>} : vector<8x64xbf16>, vector<64x64xbf16>, vector<8x64xf32> -> vector<8x64xf32>
    %c0_9 = arith.constant 0 : index
    %c0_10 = arith.constant 0 : index
    %15 = vector.load %arg5[%c0_9, %c0_10] : memref<1x64xf32, #tpu.memory_space<vmem>>, vector<1x64xf32>
    %16 = vector.broadcast %15 : vector<1x64xf32> to vector<8x64xf32>
    %17 = arith.addf %14, %16 : vector<8x64xf32>
    %18 = arith.negf %17 : vector<8x64xf32>
    %19 = math.exp %18 : vector<8x64xf32>
    %cst_11 = arith.constant 1.000000e+00 : f32
    %20 = vector.broadcast %cst_11 : f32 to vector<8x64xf32>
    %21 = arith.addf %20, %19 : vector<8x64xf32>
    %22 = arith.divf %20, %21 : vector<8x64xf32>
    %23 = arith.truncf %22 : vector<8x64xf32> to vector<8x64xbf16>
    %c0_12 = arith.constant 0 : index
    %c0_13 = arith.constant 0 : index
    %24 = vector.load %arg6[%c0_12, %c0_13] : memref<64x128xbf16, #tpu.memory_space<vmem>>, vector<64x128xbf16>
    %cst_14 = arith.constant dense<0.000000e+00> : vector<8x128xf32>
    %25 = tpu.matmul %23, %24, %cst_14 {dimension_numbers = #tpu.dot_dimension_numbers<[1], [0], [0], [1], [0, 0, 1, 1], [], []>} : vector<8x64xbf16>, vector<64x128xbf16>, vector<8x128xf32> -> vector<8x128xf32>
    %c0_15 = arith.constant 0 : index
    %c0_16 = arith.constant 0 : index
    %26 = vector.load %arg7[%c0_15, %c0_16] : memref<1x128xf32, #tpu.memory_space<vmem>>, vector<1x128xf32>
    %27 = vector.broadcast %26 : vector<1x128xf32> to vector<8x128xf32>
    %28 = arith.addf %25, %27 : vector<8x128xf32>
    %29 = arith.negf %28 : vector<8x128xf32>
    %30 = math.exp %29 : vector<8x128xf32>
    %cst_17 = arith.constant 1.000000e+00 : f32
    %31 = vector.broadcast %cst_17 : f32 to vector<8x128xf32>
    %32 = arith.addf %31, %30 : vector<8x128xf32>
    %33 = arith.divf %31, %32 : vector<8x128xf32>
    %34 = arith.truncf %33 : vector<8x128xf32> to vector<8x128xbf16>
    %c0_18 = arith.constant 0 : index
    %c0_19 = arith.constant 0 : index
    %35 = vector.load %arg8[%c0_18, %c0_19] : memref<128x128xbf16, #tpu.memory_space<vmem>>, vector<128x128xbf16>
    %cst_20 = arith.constant dense<0.000000e+00> : vector<8x128xf32>
    %36 = tpu.matmul %34, %35, %cst_20 {dimension_numbers = #tpu.dot_dimension_numbers<[1], [0], [0], [1], [0, 0, 1, 1], [], []>} : vector<8x128xbf16>, vector<128x128xbf16>, vector<8x128xf32> -> vector<8x128xf32>
    %c0_21 = arith.constant 0 : index
    %c0_22 = arith.constant 0 : index
    %37 = vector.load %arg9[%c0_21, %c0_22] : memref<1x128xf32, #tpu.memory_space<vmem>>, vector<1x128xf32>
    %38 = vector.broadcast %37 : vector<1x128xf32> to vector<8x128xf32>
    %39 = arith.addf %36, %38 : vector<8x128xf32>
    %cst_23 = arith.constant dense<0xFF800000> : vector<8xf32>
    %40 = vector.multi_reduction <maximumf>, %39, %cst_23 [1] : vector<8x128xf32> to vector<8xf32>
    %41 = vector.shape_cast %40 : vector<8xf32> to vector<8x1xf32>
    %42 = vector.broadcast %41 : vector<8x1xf32> to vector<8x128xf32>
    %43 = arith.subf %39, %42 : vector<8x128xf32>
    %44 = math.exp %43 : vector<8x128xf32>
    %cst_24 = arith.constant dense<0.000000e+00> : vector<8xf32>
    %45 = vector.multi_reduction <add>, %44, %cst_24 [1] : vector<8x128xf32> to vector<8xf32>
    %46 = vector.shape_cast %45 : vector<8xf32> to vector<8x1xf32>
    %47 = vector.broadcast %46 : vector<8x1xf32> to vector<8x128xf32>
    %48 = arith.divf %44, %47 : vector<8x128xf32>
    %49 = vector.extract_strided_slice %48 {offsets = [0, 0], sizes = [8, 10], strides = [1, 1]} : vector<8x128xf32> to vector<8x10xf32>
    %c0_25 = arith.constant 0 : index
    %c0_26 = arith.constant 0 : index
    %50 = vector.load %arg10[%c0_25, %c0_26] : memref<8x10xf32, #tpu.memory_space<vmem>>, vector<8x10xf32>
    tpu.vector_store %arg10[%c0_25, %c0_26], %49 {strides = array<i32>} : memref<8x10xf32, #tpu.memory_space<vmem>>, vector<8x10xf32>,
    return
  }
  func.func @transform_0(%arg0: i32) -> (i32, i32) {
    %c0_i32 = arith.constant 0 : i32
    %c0_i32_0 = arith.constant 0 : i32
    return %arg0, %c0_i32 : i32, i32
  }
  func.func @transform_1(%arg0: i32) -> (i32, i32) {
    %c0_i32 = arith.constant 0 : i32
    %c0_i32_0 = arith.constant 0 : i32
    %c0_i32_1 = arith.constant 0 : i32
    return %c0_i32, %c0_i32_0 : i32, i32
  }
  func.func @transform_2(%arg0: i32) -> (i32, i32) {
    %c0_i32 = arith.constant 0 : i32
    %c0_i32_0 = arith.constant 0 : i32
    %c0_i32_1 = arith.constant 0 : i32
    return %c0_i32, %c0_i32_0 : i32, i32
  }
  func.func @transform_3(%arg0: i32) -> (i32, i32) {
    %c0_i32 = arith.constant 0 : i32
    %c0_i32_0 = arith.constant 0 : i32
    %c0_i32_1 = arith.constant 0 : i32
    return %c0_i32, %c0_i32_0 : i32, i32
  }
  func.func @transform_4(%arg0: i32) -> (i32, i32) {
    %c0_i32 = arith.constant 0 : i32
    %c0_i32_0 = arith.constant 0 : i32
    %c0_i32_1 = arith.constant 0 : i32
    return %c0_i32, %c0_i32_0 : i32, i32
  }
  func.func @transform_5(%arg0: i32) -> (i32, i32) {
    %c0_i32 = arith.constant 0 : i32
    %c0_i32_0 = arith.constant 0 : i32
    %c0_i32_1 = arith.constant 0 : i32
    return %c0_i32, %c0_i32_0 : i32, i32
  }
  func.func @transform_6(%arg0: i32) -> (i32, i32) {
    %c0_i32 = arith.constant 0 : i32
    %c0_i32_0 = arith.constant 0 : i32
    %c0_i32_1 = arith.constant 0 : i32
    return %c0_i32, %c0_i32_0 : i32, i32
  }
  func.func @transform_7(%arg0: i32) -> (i32, i32) {
    %c0_i32 = arith.constant 0 : i32
    %c0_i32_0 = arith.constant 0 : i32
    %c0_i32_1 = arith.constant 0 : i32
    return %c0_i32, %c0_i32_0 : i32, i32
  }
  func.func @transform_8(%arg0: i32) -> (i32, i32) {
    %c0_i32 = arith.constant 0 : i32
    %c0_i32_0 = arith.constant 0 : i32
    %c0_i32_1 = arith.constant 0 : i32
    return %c0_i32, %c0_i32_0 : i32, i32
  }
  func.func @transform_9(%arg0: i32) -> (i32, i32) {
    %c0_i32 = arith.constant 0 : i32
    %c0_i32_0 = arith.constant 0 : i32
    return %arg0, %c0_i32 : i32, i32
  }
}

</mosaic_0001>

<bundles_post_ra>
// kernel: tpu_custom_call.1
= control target key start
LH: loop header
LB: loop body
LE: loop exit
PB: predicated region body
PF: predicated region fallthrough
CT: control target
= control target key end

     0   :  { %14 = vsyncpa [#allocation3], 0  ;;  %s926_s0 = inlined_call_operand.hbm [shape: f32[8,64], index: 0, kind: input, shape index: {}]   ;;  %s927_s1 = inlined_call_operand.hbm [shape: bf16[64,64], index: 1, kind: input, shape index: {}]   ;;  %s928_s2 = inlined_call_operand.vmem [shape: f32[1,64], index: 2, kind: input, shape index: {}]   ;;  %s929_s3 = inlined_call_operand.hbm [shape: bf16[64,64], index: 3, kind: input, shape index: {}]   ;;  %s930_s4 = inlined_call_operand.vmem [shape: f32[1,64], index: 4, kind: input, shape index: {}]   ;;  %s931_s5 = inlined_call_operand.hbm [shape: bf16[64,128], index: 5, kind: input, shape index: {}]   ;;  %s932_s6 = inlined_call_operand.vmem [shape: f32[1,128], index: 6, kind: input, shape index: {}]   ;;  %s933_s7 = inlined_call_operand.hbm [shape: bf16[128,128], index: 7, kind: input, shape index: {}]   ;;  %s934_s8 = inlined_call_operand.vmem [shape: f32[1,128], index: 8, kind: input, shape index: {}]   ;;  %s935_s9 = inlined_call_operand.hbm [shape: f32[8,10], index: 9, kind: output, shape index: {}]  }
   0x1   :  { %15 = vsyncpa [#allocation6], 0 }
   0x2   :  { %16 = vsyncpa [#allocation9], 0 }
   0x3   :  { %17 = vsyncpa [#allocation4], 0  ;;  %s793_s30 = smov [#allocation5]  }
   0x4   :  { %s33_s10 = sshll.u32 %s793_s30, 4  ;;  %s34_s10 = int_to_ptr.vmem [resolvable:$true] %s33_s10 }
   0x5   :  { %s673_s11 = scalar_lea.vmem %s34_s10, 512  ;;  %p678_p1 = scmp.lt.s32.totalorder %s34_s10, %s34_s10 }
   0x6   :  { %p674_p0 = scmp.ne.s32.totalorder %s34_s10, %s673_s11  ;;  %p679_p2 = scmp.lt.s32.totalorder %s673_s11, %s673_s11 }
   0x8   :  { %p680_p3 = por %p679_p2, %p678_p1 }
   0xa   :  { %p681_p4 = pnand %p680_p3, %p674_p0 }
   0xc   :  { %684 = shalt.err (!%p681_p4)
}
   0xd   :  { %s794_s12 = smov 64   ;;  %s795_s13 = smov 4  }
   0xe   :  { %39 = dma.hbm_to_vmem [thread:$0]  %s927_s1, 512, %s34_s10, [#allocation6], %s794_s12, %s794_s12, %s795_s13  }
   0xf   :  { %s796_s16 = smov [#allocation8]   ;;  %s797_s18 = smov [#allocation2]  }
  0x10   :  { %s61_s17 = sshll.u32 %s796_s16, 4  ;;  %s24_s19 = sshll.u32 %s797_s18, 4  ;;  %s62_s17 = int_to_ptr.vmem [resolvable:$true] %s61_s17  ;;  %s25_s19 = int_to_ptr.vmem [resolvable:$true] %s24_s19 }
  0x11   :  { %s693_s20 = scalar_lea.vmem %s62_s17, 512  ;;  %p698_p6 = scmp.lt.s32.totalorder %s62_s17, %s62_s17 }
  0x12   :  { %p694_p5 = scmp.ne.s32.totalorder %s62_s17, %s693_s20  ;;  %p699_p7 = scmp.lt.s32.totalorder %s693_s20, %s693_s20 }
  0x14   :  { %p700_p8 = por %p699_p7, %p698_p6 }
  0x16   :  { %p701_p9 = pnand %p700_p8, %p694_p5 }
  0x18   :  { %704 = shalt.err (!%p701_p9)
}
  0x19   :  { %67 = dma.hbm_to_vmem [thread:$0]  %s931_s5, 512, %s62_s17, [#allocation9], %s794_s12, %s794_s12, %s795_s13  }
  0x1a   :  { %s713_s1 = scalar_lea.vmem %s25_s19, 128  ;;  %p718_p11 = scmp.lt.s32.totalorder %s25_s19, %s25_s19 }
  0x1b   :  { %p714_p10 = scmp.ne.s32.totalorder %s25_s19, %s713_s1  ;;  %p719_p12 = scmp.lt.s32.totalorder %s713_s1, %s713_s1 }
  0x1d   :  { %p720_p13 = por %p719_p12, %p718_p11 }
  0x1f   :  { %p721_p0 = pnand %p720_p13, %p714_p10 }
  0x21   :  { %724 = shalt.err (!%p721_p0)
}
  0x22   :  { %27 = dma.hbm_to_vmem [thread:$0]  %s926_s0, 128, %s25_s19, [#allocation3]  }
  0x23   :  { %s798_s25 = smov [#allocation7]   ;;  %s799_s27 = smov [#allocation10]  }
  0x24   :  { %s47_s26 = sshll.u32 %s798_s25, 4  ;;  %s75_s28 = sshll.u32 %s799_s27, 4  ;;  %s48_s26 = int_to_ptr.vmem [resolvable:$true] %s47_s26  ;;  %s76_s28 = int_to_ptr.vmem [resolvable:$true] %s75_s28 }
  0x25   :  { %s733_s29 = scalar_lea.vmem %s48_s26, 512  ;;  %p738_p2 = scmp.lt.s32.totalorder %s48_s26, %s48_s26 }
  0x26   :  { %p734_p1 = scmp.ne.s32.totalorder %s48_s26, %s733_s29  ;;  %p739_p3 = scmp.lt.s32.totalorder %s733_s29, %s733_s29 }
  0x28   :  { %p740_p4 = por %p739_p3, %p738_p2 }
  0x2a   :  { %p741_p5 = pnand %p740_p4, %p734_p1 }
  0x2c   :  { %744 = shalt.err (!%p741_p5)
}
  0x2d   :  { %53 = dma.hbm_to_vmem [thread:$0]  %s929_s3, 512, %s48_s26, [#allocation6], %s794_s12, %s794_s12, %s795_s13  }
  0x2e   :  { %s753_s0 = scalar_lea.vmem %s76_s28, 1024  ;;  %p758_p7 = scmp.lt.s32.totalorder %s76_s28, %s76_s28 }
  0x2f   :  { %p754_p6 = scmp.ne.s32.totalorder %s76_s28, %s753_s0  ;;  %p759_p8 = scmp.lt.s32.totalorder %s753_s0, %s753_s0 }
  0x31   :  { %p760_p9 = por %p759_p8, %p758_p7 }
  0x33   :  { %p761_p10 = pnand %p760_p9, %p754_p6 }
  0x35   :  { %764 = shalt.err (!%p761_p10)
}
  0x36   :  { %81 = dma.hbm_to_vmem [thread:$0]  %s933_s7, 1024, %s76_s28, [#allocation9], %s794_s12, %s794_s12, %s795_s13  }
  0x37   :  { %785 = dma.done.wait [#allocation3], 128  }
  0x38   :  { %786 = vsyncadd [#allocation3], 4294967168 }
  0x39   :  { %787 = dma.done.wait [#allocation6], 1024  }
  0x3a   :  { %788 = vsyncadd [#allocation6], 4294966272 }
  0x3b   :  { %789 = dma.done.wait [#allocation9], 1536  }
  0x3c   :  { %790 = vsyncadd [#allocation9], 4294965760  ;;  %v800_v0 = vmov 0.0   ;;  %vm801_vm0 = vmmov 0   ;;  %v629_v1 = vld [vmem:[#allocation5 + $0x18] sm:$0xff]   ;;  %v630_v2 = vld [vmem:[#allocation5 + $0x10] sm:$0xff]  }
  0x3d   :  { %563 = vmatprep.subr.bf16.mxu0 %v800_v0  ;;  %571 = vmatprep.mubr.msk.bf16.mxu0 %vm801_vm0, %v800_v0  ;;  %v631_v3 = vld [vmem:[#allocation5 + $0x8] sm:$0xff]   ;;  %vm141_vm1 = vcmask 523264   ;;  %v632_v4 = vld [vmem:[#allocation5] sm:$0xff]   ;;  %v100_v5 = vld [vmem:[#allocation2] sm:$0xff]  ;;  %vm490_vm2 = vcmask 80896  }
  0x3e   :  { %575 = vmatprep.subr.bf16.mxu1 %v800_v0  ;;  %583 = vmatprep.mubr.msk.bf16.mxu1 %vm801_vm0, %v800_v0  ;;  %v101_v6 = vpack.c.bf16 %v100_v5, %v100_v5  ;;  %v633_v7 = vld [vmem:[#allocation7 + $0x18] sm:$0xff]   ;;  %v634_v8 = vld [vmem:[#allocation7 + $0x10] sm:$0xff]   ;;  %v635_v9 = vld [vmem:[#allocation7 + $0x8] sm:$0xff]  }
  0x3f   :  { %564 = vmatpush3.bf16.msra.mxu0 %v629_v1  ;;  %576 = vmatpush3.bf16.msra.mxu1 %v633_v7  ;;  %v636_v10 = vld [vmem:[#allocation7] sm:$0xff]   ;;  %v509_v11 = vld [vmem:[%s928_s2] ss:$0 sm:$0xff]  ;;  %v638_v23 = vld [vmem:[#allocation8 + $0x10] sm:$0xff]  }
  0x40   :  { %565 = vmatprep.subr.bf16.mxu0 %v800_v0  ;;  %577 = vmatprep.subr.bf16.mxu1 %v800_v0  ;;  %v637_v22 = vld [vmem:[#allocation8 + $0x18] sm:$0xff]   ;;  %v639_v24 = vld [vmem:[#allocation8 + $0x8] sm:$0xff]   ;;  %v640_v25 = vld [vmem:[#allocation8] sm:$0xff]  }
  0x41   :  { %v516_v26 = vld [vmem:[%s930_s4] ss:$0 sm:$0xff]  ;;  %v642_v38 = vld [vmem:[#allocation10 + $0x30] sm:$0xff]   ;;  %v643_v39 = vld [vmem:[#allocation10 + $0x28] sm:$0xff]  }
  0x42   :  { %v641_v37 = vld [vmem:[#allocation10 + $0x38] sm:$0xff]   ;;  %v644_v40 = vld [vmem:[#allocation10 + $0x20] sm:$0xff]   ;;  %v646_v42 = vld [vmem:[#allocation10 + $0x10] sm:$0xff]  }
  0x43   :  { %566 = vmatpush3.bf16.msra.mxu0 %v630_v2  ;;  %578 = vmatpush3.bf16.msra.mxu1 %v634_v8  ;;  %v645_v41 = vld [vmem:[#allocation10 + $0x18] sm:$0xff]   ;;  %v647_v43 = vld [vmem:[#allocation10 + $0x8] sm:$0xff]   ;;  %v648_v44 = vld [vmem:[#allocation10] sm:$0xff]  }
  0x44   :  { %567 = vmatprep.subr.bf16.mxu0 %v800_v0  ;;  %579 = vmatprep.subr.bf16.mxu1 %v800_v0  ;;  %v523_v45 = vld [vmem:[%s932_s6] ss:$0 sm:$0xff]  ;;  %s802_s6 = smov [#allocation11]  }
  0x45   :  { %v530_v56 = vld [vmem:[%s934_s8] ss:$0 sm:$0xff]  ;;  %s498_s16 = sshll.u32 %s802_s6, 4  ;;  %s499_s16 = int_to_ptr.vmem [resolvable:$true] %s498_s16 }
  0x46   :  { %s765_s8 = scalar_lea.vmem %s499_s16, 128  ;;  %p770_p12 = scmp.lt.s32.totalorder %s499_s16, %s499_s16 }
  0x47   :  { %568 = vmatpush3.bf16.msra.mxu0 %v631_v3  ;;  %580 = vmatpush3.bf16.msra.mxu1 %v635_v9  ;;  %p766_p11 = scmp.ne.s32.totalorder %s499_s16, %s765_s8  ;;  %p771_p13 = scmp.lt.s32.totalorder %s765_s8, %s765_s8 }
  0x48   :  { %569 = vmatprep.subr.bf16.mxu0 %v800_v0  ;;  %581 = vmatprep.subr.bf16.mxu1 %v800_v0 }
  0x49   :  { %p772_p0 = por %p771_p13, %p770_p12 }
  0x4b   :  { %570 = vmatpush3.bf16.msra.mxu0 %v632_v4  ;;  %582 = vmatpush3.bf16.msra.mxu1 %v636_v10  ;;  %p773_p1 = pnand %p772_p0, %p766_p11 }
  0x4c   :  { %587 = vmatprep.subr.bf16.mxu0 %v800_v0  ;;  %599 = vmatprep.subr.bf16.mxu1 %v800_v0 }
  0x4e   :  { %572 = vmatmul.mubr.msk.bf16.vlgmr.msra.gmra.mxu0 %vm141_vm1, %v101_v6 }
  0x4f   :  { %595 = vmatprep.mubr.msk.bf16.mxu0 %vm801_vm0, %v800_v0  ;;  %588 = vmatpush3.bf16.msra.mxu0 %v637_v22 }
  0x50   :  { %589 = vmatprep.subr.bf16.mxu0 %v800_v0 }
  0x53   :  { %590 = vmatpush3.bf16.msra.mxu0 %v638_v23 }
  0x54   :  { %591 = vmatprep.subr.bf16.mxu0 %v800_v0 }
  0x57   :  { %592 = vmatpush3.bf16.msra.mxu0 %v639_v24 }
  0x58   :  { %593 = vmatprep.subr.bf16.mxu0 %v800_v0 }
  0x5b   :  { %594 = vmatpush3.bf16.msra.mxu0 %v640_v25 }
 0x10e   :  { %v179_v12 = vpop.f32.mrf.mxu0 }
 0x10f   :  { %v180_v13 = vadd.f32 %v509_v11, %v179_v12 }
 0x110   :  { %v573_v14 = vpop.f32.mrf.mxu0 }
 0x111   :  { %v515_v15 = vmul.f32 -1.442695, %v180_v13 }
 0x112   :  { %v182_v16 = vpop.f32.mrf.mxu0 }
 0x113   :  { %649 = vpow2.f32 %v515_v15 }
 0x114   :  { %v574_v17 = vpop.f32.mrf.mxu0 }
 0x120   :  { %v650_v18 = vpop.eup %649 }
 0x121   :  { %v188_v19 = vadd.f32 1.0, %v650_v18 }
 0x123   :  { %651 = vrcp.f32 %v188_v19 }
 0x130   :  { %v652_v20 = vpop.eup %651 }
 0x131   :  { %v191_v21 = vpack.c.bf16 %v652_v20, %v652_v20 }
 0x133   :  { %584 = vmatmul.mubr.msk.bf16.vlgmr.msra.gmra.mxu1 %vm141_vm1, %v191_v21 }
 0x134   :  { %615 = vmatprep.mubr.msk.bf16.mxu1 %vm801_vm0, %v800_v0  ;;  %600 = vmatpush3.bf16.msra.mxu1 %v641_v37 }
 0x135   :  { %601 = vmatprep.subr.bf16.mxu1 %v800_v0 }
 0x138   :  { %602 = vmatpush3.bf16.msra.mxu1 %v642_v38 }
 0x139   :  { %603 = vmatprep.subr.bf16.mxu1 %v800_v0 }
 0x13c   :  { %604 = vmatpush3.bf16.msra.mxu1 %v643_v39 }
 0x13d   :  { %605 = vmatprep.subr.bf16.mxu1 %v800_v0 }
 0x140   :  { %606 = vmatpush3.bf16.msra.mxu1 %v644_v40 }
 0x141   :  { %607 = vmatprep.subr.bf16.mxu1 %v800_v0 }
 0x144   :  { %608 = vmatpush3.bf16.msra.mxu1 %v645_v41 }
 0x145   :  { %609 = vmatprep.subr.bf16.mxu1 %v800_v0 }
 0x148   :  { %610 = vmatpush3.bf16.msra.mxu1 %v646_v42 }
 0x149   :  { %611 = vmatprep.subr.bf16.mxu1 %v800_v0 }
 0x14c   :  { %612 = vmatpush3.bf16.msra.mxu1 %v647_v43 }
 0x14d   :  { %613 = vmatprep.subr.bf16.mxu1 %v800_v0 }
 0x150   :  { %614 = vmatpush3.bf16.msra.mxu1 %v648_v44 }
 0x1f3   :  { %v268_v27 = vpop.f32.mrf.mxu1 }
 0x1f4   :  { %v269_v28 = vadd.f32 %v516_v26, %v268_v27 }
 0x1f5   :  { %v585_v29 = vpop.f32.mrf.mxu1 }
 0x1f6   :  { %v522_v30 = vmul.f32 -1.442695, %v269_v28 }
 0x1f7   :  { %v271_v31 = vpop.f32.mrf.mxu1 }
 0x1f8   :  { %653 = vpow2.f32 %v522_v30 }
 0x1f9   :  { %v586_v32 = vpop.f32.mrf.mxu1 }
 0x205   :  { %v654_v33 = vpop.eup %653 }
 0x206   :  { %v277_v34 = vadd.f32 1.0, %v654_v33 }
 0x208   :  { %655 = vrcp.f32 %v277_v34 }
 0x215   :  { %v656_v35 = vpop.eup %655 }
 0x216   :  { %v280_v36 = vpack.c.bf16 %v656_v35, %v656_v35 }
 0x218   :  { %596 = vmatmul.mubr.msk.bf16.vlgmr.msra.gmra.mxu0 %vm141_vm1, %v280_v36 }
 0x2d8   :  { %v357_v46 = vpop.f32.mrf.mxu0 }
 0x2d9   :  { %v358_v47 = vadd.f32 %v523_v45, %v357_v46 }
 0x2da   :  { %v597_v48 = vpop.f32.mrf.mxu0 }
 0x2db   :  { %v529_v49 = vmul.f32 -1.442695, %v358_v47 }
 0x2dc   :  { %v360_v50 = vpop.f32.mrf.mxu0 }
 0x2dd   :  { %657 = vpow2.f32 %v529_v49 }
 0x2de   :  { %v598_v51 = vpop.f32.mrf.mxu0 }
 0x2ea   :  { %v658_v52 = vpop.eup %657 }
 0x2eb   :  { %v366_v53 = vadd.f32 1.0, %v658_v52 }
 0x2ed   :  { %659 = vrcp.f32 %v366_v53 }
 0x2fa   :  { %v660_v54 = vpop.eup %659 }
 0x2fb   :  { %v369_v55 = vpack.c.bf16 %v660_v54, %v660_v54 }
 0x2fd   :  { %616 = vmatmul.mubr.bf16.vlgmr.msra.gmra.mxu1 %v369_v55 }
 0x3bd   :  { %v475_v57 = vpop.f32.mrf.mxu1 }
 0x3be   :  { %v476_v58 = vadd.f32 %v530_v56, %v475_v57 }
 0x3bf   :  { %v617_v59 = vpop.f32.mrf.mxu1 }
 0x3c0   :  { %481 = vmax.xlane.f32.xlu0 %v476_v58 }
 0x3c1   :  { %v478_v60 = vpop.f32.mrf.mxu1 }
 0x3c3   :  { %v618_v61 = vpop.f32.mrf.mxu1 }
 0x449   :  { %v482_v62 = vpop.xlane.xlu0 %481 }
 0x44a   :  { %v483_v63 = vsub.f32 %v476_v58, %v482_v62 }
 0x44c   :  { %v484_v0 = vmul.f32 1.442695, %v483_v63 }
 0x44e   :  { %661 = vpow2.f32 %v484_v0 }
 0x45b   :  { %v662_v1 = vpop.eup %661 }
 0x45c   :  { %486 = vadd.xlane.f32.xlu0 %v662_v1 }
 0x4e5   :  { %v487_v2 = vpop.xlane.xlu0 %486 }
 0x4e6   :  { %663 = vrcp.f32 %v487_v2 }
 0x4f3   :  { %v664_v3 = vpop.eup %663 }
 0x4f4   :  { %v489_v4 = vmul.f32 %v664_v3, %v662_v1 }
 0x4f6   :  { %491 = vst.msk [vmem:[#allocation11] sm:$0xff] %vm490_vm2, %v489_v4 }
 0x4f7   :  { %776 = shalt.err (!%p773_p1)
}
 0x4f8   :  { %501 = dma.vmem_to_hbm [thread:$0]  %s499_s16, 128, %s935_s9, [#allocation4]  }
 0x4f9   :  { %791 = dma.done.wait [#allocation4], 128  }
 0x4fa   :  { %792 = vsyncadd [#allocation4], 4294967168 }
 0x4fb   :  { %505 = vsyncpa [#allocation3], 1 }
 0x4fc   :  { %506 = vsyncpa [#allocation6], 1 }
 0x4fd   :  { %507 = vsyncpa [#allocation9], 1 }
 0x4fe   :  { %508 = vsyncpa [#allocation4], 1 }

</bundles_post_ra>
